<compile_context>
chip_gen: v6e
topology: v6e:2x2x1
jax: 0.10.0
libtpu: 0.0.40
codegen_flags: <defaults>
</compile_context>

<pallas_src>
import jax
import jax.numpy as jnp
from jax import lax
from jax.experimental import pallas as pl
from jax.experimental.pallas import tpu as pltpu

# ------------------------- config (mirrors conf.*) -------------------------
D_CHAN = 32
D_KERNEL_SIZE = 3
D_N_LAYERS = 4          # -> D_N_LAYERS - 2 = 2 middle (1x1 conv + BN + ReLU) blocks
BN_EPS = 1e-5


# ------------------------------- fused kernel --------------------------------
def _discriminator_kernel(p_ref, w1_ref, b1_ref, wm_ref, bm_ref, g_ref, bt_ref,
                          wf_ref, bf_ref, o_ref):
    """Fused Discriminator forward, channels on sublanes / spatial on lanes.

    p_ref : (k*k*3, M)  im2col patches of the input, M = N*Ho*Wo
    w1_ref: (C, k*k*3)  first conv weight (already spectral-normalized), flattened
    b1_ref: (C, 1)      first conv bias
    wm_ref: (L, C, C)   middle 1x1 conv weights, applied as W @ h
    bm_ref: (L, C, 1)   middle conv biases
    g_ref : (L, C, 1)   BN gamma
    bt_ref: (L, C, 1)   BN beta
    wf_ref: (1, C)      final 1x1 conv weight
    bf_ref: (1, 1)      final conv bias
    o_ref : (1, M)      sigmoid output (lane-dense)
    """
    M = p_ref.shape[1]
    L = wm_ref.shape[0]
    inv_m = 1.0 / M

    # First conv: one MXU matmul over the im2col patches (K = k*k*3 = 27).
    h = jnp.dot(w1_ref[...], p_ref[...], preferred_element_type=jnp.float32)
    h = h + b1_ref[...]                                            # (C, M)

    # (1x1 conv -> BatchNorm(train) -> ReLU) x L; activations stay in VMEM/vregs.
    for i in range(L):
        z = jnp.dot(wm_ref[i], h, preferred_element_type=jnp.float32) + bm_ref[i]
        # training-mode BatchNorm2d: per-channel stats over the full N*Ho*Wo (lane axis)
        mean = jnp.sum(z, axis=1, keepdims=True) * inv_m
        zc = z - mean
        var = jnp.sum(zc * zc, axis=1, keepdims=True) * inv_m      # biased variance
        z = zc * lax.rsqrt(var + BN_EPS) * g_ref[i] + bt_ref[i]
        h = jnp.maximum(z, 0.0)                                    # ReLU

    # Final 1x1 conv + sigmoid; exp -> EUP, approx reciprocal -> EUP (off the VALU).
    logits = jnp.dot(wf_ref[...], h, preferred_element_type=jnp.float32) + bf_ref[...]
    sig = pl.reciprocal(1.0 + jnp.exp(-logits), approx=True)
    o_ref[...] = sig.astype(o_ref.dtype)


# ---------------------------- parameter setup -------------------------------
def _spectral_normalize(w, n_iter=50):
    # TODO(synk): PyTorch spectral_norm estimates sigma with a single power-iteration
    # step per forward (persistent random u); here we run enough iterations for an
    # (almost) exact sigma, so values differ slightly from the reference module.
    mat = w.reshape(w.shape[0], -1)
    v = jnp.ones((mat.shape[1],), jnp.float32) / (mat.shape[1] ** 0.5)
    u = jnp.ones((mat.shape[0],), jnp.float32) / (mat.shape[0] ** 0.5)
    for _ in range(n_iter):
        u = mat @ v
        u = u / (jnp.linalg.norm(u) + 1e-12)
        v = mat.T @ u
        v = v / (jnp.linalg.norm(v) + 1e-12)
    sigma = u @ (mat @ v)
    return w / sigma


def init_params(key, d_chan=D_CHAN, k=D_KERNEL_SIZE, n_layers=D_N_LAYERS):
    L = max(n_layers - 2, 0)
    keys = jax.random.split(key, 4 + 2 * L)

    def conv_w(kk, cout, cin, kh, kw):
        bound = 1.0 / (cin * kh * kw) ** 0.5        # PyTorch Conv2d default init
        return jax.random.uniform(kk, (cout, cin, kh, kw), jnp.float32, -bound, bound)

    def conv_b(kk, cout, cin, kh, kw):
        bound = 1.0 / (cin * kh * kw) ** 0.5
        return jax.random.uniform(kk, (cout,), jnp.float32, -bound, bound)

    # First conv: OIHW (C,3,k,k) -> (C, k, k, 3) -> (C, k*k*3); flat index matches the
    # im2col ordering (dy, dx, ci) built in the wrapper.
    w1 = _spectral_normalize(conv_w(keys[0], d_chan, 3, k, k))
    b1 = conv_b(keys[1], d_chan, 3, k, k)
    w1f = jnp.transpose(w1, (0, 2, 3, 1)).reshape(d_chan, k * k * 3)

    wm, bm, gm, btm = [], [], [], []
    for i in range(L):
        w = _spectral_normalize(conv_w(keys[2 + 2 * i], d_chan, d_chan, 1, 1))
        b = conv_b(keys[3 + 2 * i], d_chan, d_chan, 1, 1)
        wm.append(w.reshape(d_chan, d_chan))            # (Cout, Cin): applied as W @ h
        bm.append(b.reshape(d_chan, 1))
        gm.append(jnp.ones((d_chan, 1), jnp.float32))   # BN gamma init
        btm.append(jnp.zeros((d_chan, 1), jnp.float32))  # BN beta init

    wf = _spectral_normalize(conv_w(keys[2 + 2 * L], 1, d_chan, 1, 1))  # (1, C, 1, 1)
    bf = conv_b(keys[3 + 2 * L], 1, d_chan, 1, 1)

    return dict(
        w1f=w1f,                                        # (C, k*k*3)
        b1=b1.reshape(d_chan, 1),                       # (C, 1)
        wm=jnp.stack(wm) if L else jnp.zeros((0, d_chan, d_chan), jnp.float32),
        bm=jnp.stack(bm) if L else jnp.zeros((0, d_chan, 1), jnp.float32),
        gamma=jnp.stack(gm) if L else jnp.ones((0, d_chan, 1), jnp.float32),
        beta=jnp.stack(btm) if L else jnp.zeros((0, d_chan, 1), jnp.float32),
        wf=wf.reshape(1, d_chan),                       # (1, C)
        bf=bf.reshape(1, 1),
    )


# ------------------------------- forward ------------------------------------
@jax.jit
def discriminator_forward(params, x_nchw):
    """x_nchw: (N, 3, H, W) float32 -> (N, 1, Ho, Wo) float32 (PyTorch semantics)."""
    N, _, H, W = x_nchw.shape
    k = D_KERNEL_SIZE
    Ho, Wo = H - k + 1, W - k + 1
    M = N * Ho * Wo

    # ---- glue: im2col in the (taps*channels, spatial) orientation the kernel wants.
    # Flat tap index = (dy*k + dx)*3 + ci, matching w1f's flattening above.
    x_chw = jnp.transpose(x_nchw, (1, 0, 2, 3))               # (3, N, H, W)
    slabs = [x_chw[:, :, dy:dy + Ho, dx:dx + Wo]              # each (3, N, Ho, Wo)
             for dy in range(k) for dx in range(k)]
    patches = jnp.concatenate(slabs, axis=0).reshape(k * k * 3, M)   # (27, M)

    vmem = pl.BlockSpec(memory_space=pltpu.MemorySpace.VMEM)
    out_flat = pl.pallas_call(
        _discriminator_kernel,
        out_shape=jax.ShapeDtypeStruct((1, M), jnp.float32),
        in_specs=[vmem] * 9,
        out_specs=vmem,
    )(patches, params["w1f"], params["b1"], params["wm"], params["bm"],
      params["gamma"], params["beta"], params["wf"], params["bf"])

    # lane-dense (1, M) -> NCHW (N, 1, Ho, Wo)
    return out_flat.reshape(N, Ho, Wo)[:, None, :, :]


# --------------------------------- main --------------------------------------
if __name__ == "__main__":
    key = jax.random.PRNGKey(0)
    pkey, xkey = jax.random.split(key)

    params = init_params(pkey)
    x = jax.random.normal(xkey, (2, 3, 16, 16), jnp.float32)   # NCHW, like PyTorch

    out = jax.block_until_ready(discriminator_forward(params, x))

    Ho = 16 - D_KERNEL_SIZE + 1
    assert out.shape == (2, 1, Ho, Ho), out.shape
    assert bool(jnp.all(jnp.isfinite(out)))
    # sigmoid range (tiny slack for the approximate EUP reciprocal)
    assert bool(jnp.all((out >= 0.0) & (out <= 1.0 + 1e-2)))
    print("KERNEL_OK")
</pallas_src>

<mosaic_0001>
module attributes {stable_mosaic.version = 11 : i64} {
  func.func @_discriminator_kernel(%arg0: memref<27x392xf32, #tpu.memory_space<vmem>>, %arg1: memref<32x27xf32, #tpu.memory_space<vmem>>, %arg2: memref<32x1xf32, #tpu.memory_space<vmem>>, %arg3: memref<2x32x32xf32, #tpu.memory_space<vmem>>, %arg4: memref<2x32x1xf32, #tpu.memory_space<vmem>>, %arg5: memref<2x32x1xf32, #tpu.memory_space<vmem>>, %arg6: memref<2x32x1xf32, #tpu.memory_space<vmem>>, %arg7: memref<1x32xf32, #tpu.memory_space<vmem>>, %arg8: memref<1x1xf32, #tpu.memory_space<vmem>>, %arg9: memref<1x392xf32, #tpu.memory_space<vmem>>) attributes {dimension_semantics = [], scalar_prefetch = 0 : i64, scratch_operands = 0 : i64, tpu.core_type = #tpu.core_type<tc>} {
    %c0 = arith.constant 0 : index
    %c0_0 = arith.constant 0 : index
    %0 = vector.load %arg1[%c0, %c0_0] : memref<32x27xf32, #tpu.memory_space<vmem>>, vector<32x27xf32>
    %c0_1 = arith.constant 0 : index
    %c0_2 = arith.constant 0 : index
    %1 = vector.load %arg0[%c0_1, %c0_2] : memref<27x392xf32, #tpu.memory_space<vmem>>, vector<27x392xf32>
    %cst = arith.constant dense<0.000000e+00> : vector<32x392xf32>
    %2 = tpu.matmul %0, %1, %cst {dimension_numbers = #tpu.dot_dimension_numbers<[1], [0], [0], [1], [0, 0, 1, 1], [], []>} : vector<32x27xf32>, vector<27x392xf32>, vector<32x392xf32> -> vector<32x392xf32>
    %c0_3 = arith.constant 0 : index
    %c0_4 = arith.constant 0 : index
    %3 = vector.load %arg2[%c0_3, %c0_4] : memref<32x1xf32, #tpu.memory_space<vmem>>, vector<32x1xf32>
    %4 = vector.broadcast %3 : vector<32x1xf32> to vector<32x392xf32>
    %5 = arith.addf %2, %4 : vector<32x392xf32>
    %c0_5 = arith.constant 0 : index
    %c0_6 = arith.constant 0 : index
    %c0_7 = arith.constant 0 : index
    %6 = vector.load %arg3[%c0_5, %c0_6, %c0_7] : memref<2x32x32xf32, #tpu.memory_space<vmem>>, vector<1x32x32xf32>
    %7 = vector.shape_cast %6 : vector<1x32x32xf32> to vector<32x32xf32>
    %cst_8 = arith.constant dense<0.000000e+00> : vector<32x392xf32>
    %8 = tpu.matmul %7, %5, %cst_8 {dimension_numbers = #tpu.dot_dimension_numbers<[1], [0], [0], [1], [0, 0, 1, 1], [], []>} : vector<32x32xf32>, vector<32x392xf32>, vector<32x392xf32> -> vector<32x392xf32>
    %c0_9 = arith.constant 0 : index
    %c0_10 = arith.constant 0 : index
    %c0_11 = arith.constant 0 : index
    %9 = vector.load %arg4[%c0_9, %c0_10, %c0_11] : memref<2x32x1xf32, #tpu.memory_space<vmem>>, vector<1x32x1xf32>
    %10 = vector.shape_cast %9 : vector<1x32x1xf32> to vector<32x1xf32>
    %11 = vector.broadcast %10 : vector<32x1xf32> to vector<32x392xf32>
    %12 = arith.addf %8, %11 : vector<32x392xf32>
    %cst_12 = arith.constant dense<0.000000e+00> : vector<32xf32>
    %13 = vector.multi_reduction <add>, %12, %cst_12 [1] : vector<32x392xf32> to vector<32xf32>
    %14 = vector.shape_cast %13 : vector<32xf32> to vector<32x1xf32>
    %cst_13 = arith.constant 0.00255102036 : f32
    %15 = vector.broadcast %cst_13 : f32 to vector<32x1xf32>
    %16 = arith.mulf %14, %15 : vector<32x1xf32>
    %17 = vector.broadcast %16 : vector<32x1xf32> to vector<32x392xf32>
    %18 = arith.subf %12, %17 : vector<32x392xf32>
    %19 = arith.mulf %18, %18 : vector<32x392xf32>
    %cst_14 = arith.constant dense<0.000000e+00> : vector<32xf32>
    %20 = vector.multi_reduction <add>, %19, %cst_14 [1] : vector<32x392xf32> to vector<32xf32>
    %21 = vector.shape_cast %20 : vector<32xf32> to vector<32x1xf32>
    %cst_15 = arith.constant 0.00255102036 : f32
    %22 = vector.broadcast %cst_15 : f32 to vector<32x1xf32>
    %23 = arith.mulf %21, %22 : vector<32x1xf32>
    %cst_16 = arith.constant 9.99999974E-6 : f32
    %24 = vector.broadcast %cst_16 : f32 to vector<32x1xf32>
    %25 = arith.addf %23, %24 : vector<32x1xf32>
    %26 = math.rsqrt %25 : vector<32x1xf32>
    %27 = vector.broadcast %26 : vector<32x1xf32> to vector<32x392xf32>
    %28 = arith.mulf %18, %27 : vector<32x392xf32>
    %c0_17 = arith.constant 0 : index
    %c0_18 = arith.constant 0 : index
    %c0_19 = arith.constant 0 : index
    %29 = vector.load %arg5[%c0_17, %c0_18, %c0_19] : memref<2x32x1xf32, #tpu.memory_space<vmem>>, vector<1x32x1xf32>
    %30 = vector.shape_cast %29 : vector<1x32x1xf32> to vector<32x1xf32>
    %31 = vector.broadcast %30 : vector<32x1xf32> to vector<32x392xf32>
    %32 = arith.mulf %28, %31 : vector<32x392xf32>
    %c0_20 = arith.constant 0 : index
    %c0_21 = arith.constant 0 : index
    %c0_22 = arith.constant 0 : index
    %33 = vector.load %arg6[%c0_20, %c0_21, %c0_22] : memref<2x32x1xf32, #tpu.memory_space<vmem>>, vector<1x32x1xf32>
    %34 = vector.shape_cast %33 : vector<1x32x1xf32> to vector<32x1xf32>
    %35 = vector.broadcast %34 : vector<32x1xf32> to vector<32x392xf32>
    %36 = arith.addf %32, %35 : vector<32x392xf32>
    %cst_23 = arith.constant 0.000000e+00 : f32
    %37 = vector.broadcast %cst_23 : f32 to vector<32x392xf32>
    %38 = arith.maximumf %36, %37 : vector<32x392xf32>
    %c1 = arith.constant 1 : index
    %c0_24 = arith.constant 0 : index
    %c0_25 = arith.constant 0 : index
    %39 = vector.load %arg3[%c1, %c0_24, %c0_25] : memref<2x32x32xf32, #tpu.memory_space<vmem>>, vector<1x32x32xf32>
    %40 = vector.shape_cast %39 : vector<1x32x32xf32> to vector<32x32xf32>
    %cst_26 = arith.constant dense<0.000000e+00> : vector<32x392xf32>
    %41 = tpu.matmul %40, %38, %cst_26 {dimension_numbers = #tpu.dot_dimension_numbers<[1], [0], [0], [1], [0, 0, 1, 1], [], []>} : vector<32x32xf32>, vector<32x392xf32>, vector<32x392xf32> -> vector<32x392xf32>
    %c1_27 = arith.constant 1 : index
    %c0_28 = arith.constant 0 : index
    %c0_29 = arith.constant 0 : index
    %42 = vector.load %arg4[%c1_27, %c0_28, %c0_29] : memref<2x32x1xf32, #tpu.memory_space<vmem>>, vector<1x32x1xf32>
    %43 = vector.shape_cast %42 : vector<1x32x1xf32> to vector<32x1xf32>
    %44 = vector.broadcast %43 : vector<32x1xf32> to vector<32x392xf32>
    %45 = arith.addf %41, %44 : vector<32x392xf32>
    %cst_30 = arith.constant dense<0.000000e+00> : vector<32xf32>
    %46 = vector.multi_reduction <add>, %45, %cst_30 [1] : vector<32x392xf32> to vector<32xf32>
    %47 = vector.shape_cast %46 : vector<32xf32> to vector<32x1xf32>
    %cst_31 = arith.constant 0.00255102036 : f32
    %48 = vector.broadcast %cst_31 : f32 to vector<32x1xf32>
    %49 = arith.mulf %47, %48 : vector<32x1xf32>
    %50 = vector.broadcast %49 : vector<32x1xf32> to vector<32x392xf32>
    %51 = arith.subf %45, %50 : vector<32x392xf32>
    %52 = arith.mulf %51, %51 : vector<32x392xf32>
    %cst_32 = arith.constant dense<0.000000e+00> : vector<32xf32>
    %53 = vector.multi_reduction <add>, %52, %cst_32 [1] : vector<32x392xf32> to vector<32xf32>
    %54 = vector.shape_cast %53 : vector<32xf32> to vector<32x1xf32>
    %cst_33 = arith.constant 0.00255102036 : f32
    %55 = vector.broadcast %cst_33 : f32 to vector<32x1xf32>
    %56 = arith.mulf %54, %55 : vector<32x1xf32>
    %cst_34 = arith.constant 9.99999974E-6 : f32
    %57 = vector.broadcast %cst_34 : f32 to vector<32x1xf32>
    %58 = arith.addf %56, %57 : vector<32x1xf32>
    %59 = math.rsqrt %58 : vector<32x1xf32>
    %60 = vector.broadcast %59 : vector<32x1xf32> to vector<32x392xf32>
    %61 = arith.mulf %51, %60 : vector<32x392xf32>
    %c1_35 = arith.constant 1 : index
    %c0_36 = arith.constant 0 : index
    %c0_37 = arith.constant 0 : index
    %62 = vector.load %arg5[%c1_35, %c0_36, %c0_37] : memref<2x32x1xf32, #tpu.memory_space<vmem>>, vector<1x32x1xf32>
    %63 = vector.shape_cast %62 : vector<1x32x1xf32> to vector<32x1xf32>
    %64 = vector.broadcast %63 : vector<32x1xf32> to vector<32x392xf32>
    %65 = arith.mulf %61, %64 : vector<32x392xf32>
    %c1_38 = arith.constant 1 : index
    %c0_39 = arith.constant 0 : index
    %c0_40 = arith.constant 0 : index
    %66 = vector.load %arg6[%c1_38, %c0_39, %c0_40] : memref<2x32x1xf32, #tpu.memory_space<vmem>>, vector<1x32x1xf32>
    %67 = vector.shape_cast %66 : vector<1x32x1xf32> to vector<32x1xf32>
    %68 = vector.broadcast %67 : vector<32x1xf32> to vector<32x392xf32>
    %69 = arith.addf %65, %68 : vector<32x392xf32>
    %cst_41 = arith.constant 0.000000e+00 : f32
    %70 = vector.broadcast %cst_41 : f32 to vector<32x392xf32>
    %71 = arith.maximumf %69, %70 : vector<32x392xf32>
    %c0_42 = arith.constant 0 : index
    %c0_43 = arith.constant 0 : index
    %72 = vector.load %arg7[%c0_42, %c0_43] : memref<1x32xf32, #tpu.memory_space<vmem>>, vector<1x32xf32>
    %cst_44 = arith.constant dense<0.000000e+00> : vector<1x392xf32>
    %73 = tpu.matmul %72, %71, %cst_44 {dimension_numbers = #tpu.dot_dimension_numbers<[1], [0], [0], [1], [0, 0, 1, 1], [], []>} : vector<1x32xf32>, vector<32x392xf32>, vector<1x392xf32> -> vector<1x392xf32>
    %c0_45 = arith.constant 0 : index
    %c0_46 = arith.constant 0 : index
    %74 = vector.load %arg8[%c0_45, %c0_46] : memref<1x1xf32, #tpu.memory_space<vmem>>, vector<1x1xf32>
    %75 = vector.broadcast %74 : vector<1x1xf32> to vector<1x392xf32>
    %76 = arith.addf %73, %75 : vector<1x392xf32>
    %cst_47 = arith.constant 0.000000e+00 : f32
    %77 = vector.broadcast %cst_47 : f32 to vector<1x392xf32>
    %78 = arith.subf %77, %76 : vector<1x392xf32>
    %79 = math.exp %78 : vector<1x392xf32>
    %cst_48 = arith.constant 1.000000e+00 : f32
    %80 = vector.broadcast %cst_48 : f32 to vector<1x392xf32>
    %81 = arith.addf %80, %79 : vector<1x392xf32>
    %82 = tpu.reciprocal %81 {approx = true} : vector<1x392xf32> -> vector<1x392xf32>
    %c0_49 = arith.constant 0 : index
    %c0_50 = arith.constant 0 : index
    %83 = vector.load %arg9[%c0_49, %c0_50] : memref<1x392xf32, #tpu.memory_space<vmem>>, vector<1x392xf32>
    tpu.vector_store %arg9[%c0_49, %c0_50], %82 {strides = array<i32>} : memref<1x392xf32, #tpu.memory_space<vmem>>, vector<1x392xf32>,
    return
  }
}

</mosaic_0001>

<bundles_post_ra>
// kernel: discriminator_forward.1
= control target key start
LH: loop header
LB: loop body
LE: loop exit
PB: predicated region body
PF: predicated region fallthrough
CT: control target
= control target key end

     0   :  { %vm91_vm0 = vcmask 1042432   ;;  %v1437_v3 = vmov 0.0   ;;  %vm78_vm1 = vcmask 220160   ;;  %v1438_v21 = vmov 0   ;;  %s1973_s0 = inlined_call_operand.vmem [shape: f32[27,392], index: 0, kind: input, shape index: {}]   ;;  %s1974_s1 = inlined_call_operand.vmem [shape: f32[32,27], index: 1, kind: input, shape index: {}]   ;;  %s1975_s2 = inlined_call_operand.vmem [shape: f32[32,1], index: 2, kind: input, shape index: {}]   ;;  %s1976_s4 = inlined_call_operand.vmem [shape: f32[2,32,1], index: 4, kind: input, shape index: {}]   ;;  %s1977_s3 = inlined_call_operand.vmem [shape: f32[2,32,32], index: 3, kind: input, shape index: {}]   ;;  %s1978_s5 = inlined_call_operand.vmem [shape: f32[2,32,1], index: 5, kind: input, shape index: {}]   ;;  %s1979_s6 = inlined_call_operand.vmem [shape: f32[2,32,1], index: 6, kind: input, shape index: {}]   ;;  %s1980_s8 = inlined_call_operand.<no memory space> [shape: f32[1,1], index: 8, kind: input, shape index: {}]   ;;  %s1981_s7 = inlined_call_operand.vmem [shape: f32[1,32], index: 7, kind: input, shape index: {}]   ;;  %s1982_s9 = inlined_call_operand.vmem [shape: f32[1,392], index: 9, kind: output, shape index: {}]  }
   0x1   :  { %v51_v0 = vld [vmem:[%s1973_s0 + $0x68] sm:$0x7]  ;;  %v53_v1 = vld [vmem:[%s1973_s0 + $0x78] sm:$0x7]  ;;  %v50_v2 = vld [vmem:[%s1973_s0 + $0x60] sm:$0x7]  ;;  %168 = vmatprep.mubr.f32.mxu0 %v1437_v3  ;;  %257 = vmatprep.mubr.f32.mxu1 %v1437_v3 }
   0x2   :  { %1354 = vmatprep.subr.msk.mxu0 %vm91_vm0, %v51_v0  ;;  %1360 = vmatprep.subr.msk.mxu1 %vm91_vm0, %v53_v1  ;;  %v52_v4 = vld [vmem:[%s1973_s0 + $0x70] sm:$0x7]  ;;  %v47_v5 = vld [vmem:[%s1973_s0 + $0x48] sm:$0xff]  ;;  %v49_v6 = vld [vmem:[%s1973_s0 + $0x58] sm:$0xff]  ;;  %vm310_vm2 = vcmask 261120   ;;  %vm503_vm3 = vcmask 64512  }
   0x3   :  { %1355 = vmatpush1.msk.msra.mxu0 %vm91_vm0, %v50_v2  ;;  %1361 = vmatpush1.msk.msra.mxu1 %vm91_vm0, %v52_v4  ;;  %v46_v7 = vld [vmem:[%s1973_s0 + $0x40] sm:$0xff]  ;;  %v48_v8 = vld [vmem:[%s1973_s0 + $0x50] sm:$0xff]  ;;  %v43_v9 = vld [vmem:[%s1973_s0 + $0x28] sm:$0xff] }
   0x4   :  { %130 = vmatprep.subr.mxu0 %v47_v5  ;;  %219 = vmatprep.subr.mxu1 %v49_v6  ;;  %v45_v10 = vld [vmem:[%s1973_s0 + $0x38] sm:$0xff]  ;;  %v42_v11 = vld [vmem:[%s1973_s0 + $0x20] sm:$0xff]  ;;  %v44_v12 = vld [vmem:[%s1973_s0 + $0x30] sm:$0xff] }
   0x5   :  { %131 = vmatpush1.msra.mxu0 %v46_v7  ;;  %220 = vmatpush1.msra.mxu1 %v48_v8  ;;  %v39_v13 = vld [vmem:[%s1973_s0 + $0x8] sm:$0xff]  ;;  %v41_v14 = vld [vmem:[%s1973_s0 + $0x18] sm:$0xff]  ;;  %v38_v15 = vld [vmem:[%s1973_s0] sm:$0xff] }
   0x6   :  { %132 = vmatprep.subr.mxu0 %v43_v9  ;;  %221 = vmatprep.subr.mxu1 %v45_v10  ;;  %v40_v16 = vld [vmem:[%s1973_s0 + $0x10] sm:$0xff]  ;;  %v34_v17 = vld [vmem:[%s1974_s1] sm:$0xff]  ;;  %v55_v18 = vld [vmem:[%s1975_s2 + $0x8] sm:$0xff] }
   0x7   :  { %133 = vmatpush1.msra.mxu0 %v42_v11  ;;  %222 = vmatpush1.msra.mxu1 %v44_v12  ;;  %v57_v19 = vld [vmem:[%s1975_s2 + $0x18] sm:$0xff]  ;;  %v35_v20 = vld [vmem:[%s1974_s1 + $0x8] sm:$0xff]  ;;  %v54_v22 = vld [vmem:[%s1975_s2] sm:$0xff] }
   0x8   :  { %134 = vmatprep.subr.mxu0 %v39_v13  ;;  %223 = vmatprep.subr.mxu1 %v41_v14  ;;  %v56_v23 = vld [vmem:[%s1975_s2 + $0x10] sm:$0xff]  ;;  %v289_v25 = vld [vmem:[%s1976_s4 + $0x18] sm:$0xff]  ;;  %v287_v28 = vld [vmem:[%s1976_s4 + $0x8] sm:$0xff] }
   0x9   :  { %135 = vmatpush1.msra.mxu0 %v38_v15  ;;  %224 = vmatpush1.msra.mxu1 %v40_v16  ;;  %v36_v24 = vld [vmem:[%s1974_s1 + $0x10] sm:$0xff]  ;;  %v37_v27 = vld [vmem:[%s1974_s1 + $0x18] sm:$0xff]  ;;  %v286_v29 = vld [vmem:[%s1976_s4] sm:$0xff] }
   0xa   :  { %1356 = vmatmul.mubr.msk.f32.vlgmr.msra.gmra.mxu0 %vm78_vm1, %v34_v17  ;;  %1362 = vmatmul.mubr.msk.f32.vlgmr.msra.gmra.mxu1 %vm78_vm1, %v34_v17  ;;  %v288_v26 = vld [vmem:[%s1976_s4 + $0x10] sm:$0xff]  ;;  %v282_v2 = vld [vmem:[%s1977_s3] sm:$0xff]  ;;  %v283_v4 = vld [vmem:[%s1977_s3 + $0x8] sm:$0xff] }
   0xb   :  { %174 = vmatprep.mubr.f32.mxu0 %v1437_v3  ;;  %263 = vmatprep.mubr.f32.mxu1 %v1437_v3  ;;  %v284_v5 = vld [vmem:[%s1977_s3 + $0x10] sm:$0xff]  ;;  %v285_v6 = vld [vmem:[%s1977_s3 + $0x18] sm:$0xff] }
   0xc   :  { %1404 = vset.pattern.permute.xlu1 %v1438_v21  ;;  %1403 = vset.pattern.permute.xlu0 %v1438_v21 }
   0xd   :  { %65 = vperm.xlu1 %1404, %v55_v18   ;;  %75 = vperm.xlu0 %1403, %v57_v19  }
   0xe   :  { %1357 = vmatmul.mubr.msk.f32.gmra.mxu0 %vm78_vm1, %v35_v20  ;;  %1363 = vmatmul.mubr.msk.f32.gmra.mxu1 %vm78_vm1, %v35_v20 }
   0xf   :  { %180 = vmatprep.mubr.f32.mxu0 %v1437_v3  ;;  %269 = vmatprep.mubr.f32.mxu1 %v1437_v3 }
  0x11   :  { %60 = vperm.xlu1 %1404, %v54_v22   ;;  %70 = vperm.xlu0 %1403, %v56_v23  }
  0x12   :  { %1358 = vmatmul.mubr.msk.f32.gmra.mxu0 %vm78_vm1, %v36_v24  ;;  %1364 = vmatmul.mubr.msk.f32.gmra.mxu1 %vm78_vm1, %v36_v24 }
  0x13   :  { %186 = vmatprep.mubr.f32.mxu0 %v1437_v3  ;;  %275 = vmatprep.mubr.f32.mxu1 %v1437_v3 }
  0x15   :  { %307 = vperm.xlu0 %1403, %v289_v25   ;;  %302 = vperm.xlu1 %1404, %v288_v26  }
  0x16   :  { %1359 = vmatmul.mubr.msk.f32.gmra.mxu0 %vm78_vm1, %v37_v27  ;;  %1365 = vmatmul.mubr.msk.f32.gmra.mxu1 %vm78_vm1, %v37_v27 }
  0x17   :  { %387 = vmatprep.mubr.f32.mxu0 %v1437_v3  ;;  %476 = vmatprep.mubr.f32.mxu1 %v1437_v3 }
  0x19   :  { %297 = vperm.xlu0 %1403, %v287_v28   ;;  %292 = vperm.xlu1 %1404, %v286_v29  }
  0x88   :  { %v76_v40 = vpop.permute.xlu0 %75  ;;  %v66_v45 = vpop.permute.xlu1 %65 }
  0x8c   :  { %v71_v50 = vpop.permute.xlu0 %70  ;;  %v61_v57 = vpop.permute.xlu1 %60 }
  0x90   :  { %v308_v13 = vpop.permute.xlu0 %307  ;;  %v303_v18 = vpop.permute.xlu1 %302 }
  0x94   :  { %v298_v21 = vpop.permute.xlu0 %297 }
  0xca   :  { %v170_v30 = vpop.f32.mrf.mxu0  ;;  %v259_v31 = vpop.f32.mrf.mxu1 }
  0xcb   :  { %v171_v0 = vadd.f32 %v170_v30, %v61_v57  ;;  %v260_v1 = vadd.f32 %v259_v31, %v61_v57 }
  0xcc   :  { %v172_v32 = vpop.f32.mrf.mxu0  ;;  %v261_v33 = vpop.f32.mrf.mxu1 }
  0xcd   :  { %v173_v62 = vadd.f32 %v172_v32, %v61_v57  ;;  %v262_v63 = vadd.f32 %v261_v33, %v61_v57  ;;  %v293_v32 = vpop.permute.xlu1 %292 }
  0xce   :  { %v176_v34 = vpop.f32.mrf.mxu0  ;;  %v265_v35 = vpop.f32.mrf.mxu1 }
  0xcf   :  { %v177_v60 = vadd.f32 %v176_v34, %v66_v45  ;;  %v266_v61 = vadd.f32 %v265_v35, %v66_v45 }
  0xd0   :  { %v178_v36 = vpop.f32.mrf.mxu0  ;;  %v267_v37 = vpop.f32.mrf.mxu1 }
  0xd1   :  { %v179_v58 = vadd.f32 %v178_v36, %v66_v45  ;;  %v268_v59 = vadd.f32 %v267_v37, %v66_v45 }
  0xd2   :  { %v182_v38 = vpop.f32.mrf.mxu0  ;;  %v271_v39 = vpop.f32.mrf.mxu1 }
  0xd3   :  { %v183_v55 = vadd.f32 %v182_v38, %v71_v50  ;;  %v272_v56 = vadd.f32 %v271_v39, %v71_v50 }
  0xd4   :  { %v184_v41 = vpop.f32.mrf.mxu0  ;;  %v273_v42 = vpop.f32.mrf.mxu1 }
  0xd5   :  { %v185_v53 = vadd.f32 %v184_v41, %v71_v50  ;;  %v274_v54 = vadd.f32 %v273_v42, %v71_v50 }
  0xd6   :  { %v188_v43 = vpop.f32.mrf.mxu0  ;;  %v277_v44 = vpop.f32.mrf.mxu1 }
  0xd7   :  { %v189_v51 = vadd.f32 %v188_v43, %v76_v40  ;;  %v278_v52 = vadd.f32 %v277_v44, %v76_v40 }
  0xd8   :  { %v190_v46 = vpop.f32.mrf.mxu0  ;;  %v279_v47 = vpop.f32.mrf.mxu1 }
  0xd9   :  { %v191_v48 = vadd.f32 %v190_v46, %v76_v40  ;;  %v280_v49 = vadd.f32 %v279_v47, %v76_v40 }
  0xdb   :  { %347 = vmatprep.subr.mxu0 %v191_v48  ;;  %436 = vmatprep.subr.mxu1 %v280_v49 }
  0xdc   :  { %348 = vmatpush1.msra.mxu0 %v189_v51  ;;  %437 = vmatpush1.msra.mxu1 %v278_v52 }
  0xdd   :  { %349 = vmatprep.subr.mxu0 %v185_v53  ;;  %438 = vmatprep.subr.mxu1 %v274_v54 }
  0xde   :  { %350 = vmatpush1.msra.mxu0 %v183_v55  ;;  %439 = vmatpush1.msra.mxu1 %v272_v56 }
  0xdf   :  { %351 = vmatprep.subr.mxu0 %v179_v58  ;;  %440 = vmatprep.subr.mxu1 %v268_v59  ;;  %v617_v59 = vld [vmem:[%s1978_s5 + $0x18] sm:$0xff] }
  0xe0   :  { %352 = vmatpush1.msra.mxu0 %v177_v60  ;;  %441 = vmatpush1.msra.mxu1 %v266_v61  ;;  %v657_v60 = vld [vmem:[%s1979_s6 + $0x18] sm:$0xff]  ;;  %v615_v61 = vld [vmem:[%s1978_s5 + $0x8] sm:$0xff] }
  0xe1   :  { %353 = vmatprep.subr.mxu0 %v173_v62  ;;  %442 = vmatprep.subr.mxu1 %v262_v63  ;;  %v614_v62 = vld [vmem:[%s1978_s5] sm:$0xff]  ;;  %v616_v63 = vld [vmem:[%s1978_s5 + $0x10] sm:$0xff] }
  0xe2   :  { %354 = vmatpush1.msra.mxu0 %v171_v0  ;;  %443 = vmatpush1.msra.mxu1 %v260_v1  ;;  %v656_v0 = vld [vmem:[%s1979_s6 + $0x10] sm:$0xff] }
  0xe3   :  { %1366 = vmatmul.mubr.msk.f32.vlgmr.msra.gmra.mxu0 %vm310_vm2, %v282_v2  ;;  %1370 = vmatmul.mubr.msk.f32.vlgmr.msra.gmra.mxu1 %vm310_vm2, %v282_v2 }
  0xe4   :  { %393 = vmatprep.mubr.f32.mxu0 %v1437_v3  ;;  %482 = vmatprep.mubr.f32.mxu1 %v1437_v3 }
  0xe7   :  { %1367 = vmatmul.mubr.msk.f32.gmra.mxu0 %vm310_vm2, %v283_v4  ;;  %1371 = vmatmul.mubr.msk.f32.gmra.mxu1 %vm310_vm2, %v283_v4 }
  0xe8   :  { %399 = vmatprep.mubr.f32.mxu0 %v1437_v3  ;;  %488 = vmatprep.mubr.f32.mxu1 %v1437_v3 }
  0xeb   :  { %1368 = vmatmul.mubr.msk.f32.gmra.mxu0 %vm310_vm2, %v284_v5  ;;  %1372 = vmatmul.mubr.msk.f32.gmra.mxu1 %vm310_vm2, %v284_v5 }
  0xec   :  { %405 = vmatprep.mubr.f32.mxu0 %v1437_v3  ;;  %494 = vmatprep.mubr.f32.mxu1 %v1437_v3 }
  0xef   :  { %1369 = vmatmul.mubr.msk.f32.gmra.mxu0 %vm310_vm2, %v285_v6  ;;  %1373 = vmatmul.mubr.msk.f32.gmra.mxu1 %vm310_vm2, %v285_v6 }
  0xf0   :  { %816 = vmatprep.mubr.f32.mxu0 %v1437_v3  ;;  %905 = vmatprep.mubr.f32.mxu1 %v1437_v3 }
 0x1a3   :  { %v389_v7 = vpop.f32.mrf.mxu0  ;;  %v478_v8 = vpop.f32.mrf.mxu1 }
 0x1a4   :  { %v390_v44 = vadd.f32 %v389_v7, %v293_v32  ;;  %v479_v52 = vadd.f32 %v478_v8, %v293_v32 }
 0x1a5   :  { %v391_v9 = vpop.f32.mrf.mxu0  ;;  %v480_v10 = vpop.f32.mrf.mxu1 }
 0x1a6   :  { %v1627_v37 = vadd.f32 %v391_v9, %v293_v32  ;;  %v481_v53 = vadd.f32 %v480_v10, %v293_v32 }
 0x1a7   :  { %v395_v11 = vpop.f32.mrf.mxu0  ;;  %v484_v12 = vpop.f32.mrf.mxu1 }
 0x1a8   :  { %v396_v33 = vadd.f32 %v395_v11, %v298_v21  ;;  %v485_v45 = vadd.f32 %v484_v12, %v298_v21  ;;  %v501_v49 = vadd.f32 %v1627_v37, %v390_v44  ;;  %v504_v57 = vsel %vm503_vm3, %v481_v53, 0.0 }
 0x1a9   :  { %v397_v14 = vpop.f32.mrf.mxu0  ;;  %v486_v15 = vpop.f32.mrf.mxu1 }
 0x1aa   :  { %v1622_v27 = vadd.f32 %v397_v14, %v298_v21  ;;  %v487_v47 = vadd.f32 %v486_v15, %v298_v21  ;;  %v502_v56 = vadd.f32 %v501_v49, %v479_v52 }
 0x1ab   :  { %v401_v16 = vpop.f32.mrf.mxu0  ;;  %v490_v17 = vpop.f32.mrf.mxu1 }
 0x1ac   :  { %v402_v22 = vadd.f32 %v401_v16, %v303_v18  ;;  %v1624_v28 = vadd.f32 %v490_v17, %v303_v18  ;;  %v508_v40 = vadd.f32 %v1622_v27, %v396_v33  ;;  %v510_v54 = vsel %vm503_vm3, %v487_v47, 0.0 }
 0x1ad   :  { %v403_v19 = vpop.f32.mrf.mxu0  ;;  %v492_v20 = vpop.f32.mrf.mxu1  ;;  %v505_v58 = vadd.f32 %v504_v57, %v502_v56 }
 0x1ae   :  { %v404_v23 = vadd.f32 %v403_v19, %v303_v18  ;;  %v1620_v24 = vadd.f32 %v492_v20, %v303_v18  ;;  %v509_v51 = vadd.f32 %v508_v40, %v485_v45 }
 0x1af   :  { %v407_v25 = vpop.f32.mrf.mxu0  ;;  %v496_v26 = vpop.f32.mrf.mxu1 }
 0x1b0   :  { %v514_v29 = vadd.f32 %v404_v23, %v402_v22  ;;  %v408_v34 = vadd.f32 %v407_v25, %v308_v13  ;;  %v516_v39 = vsel %vm503_vm3, %v1620_v24, 0.0  ;;  %v497_v41 = vadd.f32 %v496_v26, %v308_v13 }
 0x1b1   :  { %v409_v30 = vpop.f32.mrf.mxu0  ;;  %v498_v31 = vpop.f32.mrf.mxu1  ;;  %v511_v55 = vadd.f32 %v510_v54, %v509_v51 }
 0x1b2   :  { %v410_v35 = vadd.f32 %v409_v30, %v308_v13  ;;  %v515_v36 = vadd.f32 %v514_v29, %v1624_v28  ;;  %v1629_v38 = vadd.f32 %v498_v31, %v308_v13 }
 0x1b4   :  { %v520_v42 = vadd.f32 %v410_v35, %v408_v34  ;;  %v517_v43 = vadd.f32 %v516_v39, %v515_v36  ;;  %v522_v48 = vsel %vm503_vm3, %v1629_v38, 0.0 }
 0x1b6   :  { %518 = vadd.xlane.f32.xlu1 %v517_v43  ;;  %v521_v46 = vadd.f32 %v520_v42, %v497_v41 }
 0x1b8   :  { %v523_v50 = vadd.f32 %v522_v48, %v521_v46 }
 0x1ba   :  { %524 = vadd.xlane.f32.xlu0 %v523_v50 }
 0x1be   :  { %512 = vadd.xlane.f32.xlu0 %v511_v55 }
 0x1c2   :  { %506 = vadd.xlane.f32.xlu0 %v505_v58  ;;  %v654_v58 = vld [vmem:[%s1979_s6] sm:$0xff] }
 0x1c7   :  { %635 = vperm.xlu1 %1404, %v617_v59   ;;  %v1380_v59 = vld [vmem:[%s1976_s4 + $0x30] sm:$0xff] }
 0x1cb   :  { %675 = vperm.xlu1 %1404, %v657_v60   ;;  %v1378_v60 = vld [vmem:[%s1976_s4 + $0x20] sm:$0xff] }
 0x1cf   :  { %625 = vperm.xlu1 %1404, %v615_v61   ;;  %v655_v61 = vld [vmem:[%s1979_s6 + $0x8] sm:$0xff] }
 0x1d3   :  { %620 = vperm.xlu1 %1404, %v614_v62   ;;  %v1381_v62 = vld [vmem:[%s1976_s4 + $0x38] sm:$0xff] }
 0x1d8   :  { %630 = vperm.xlu0 %1403, %v616_v63   ;;  %v1379_v63 = vld [vmem:[%s1976_s4 + $0x28] sm:$0xff] }
 0x1dc   :  { %670 = vperm.xlu0 %1403, %v656_v0  }
 0x23f   :  { %v519_v1 = vpop.xlane.xlu1 %518 }
 0x240   :  { %v528_v2 = vmul.f32 0.0025510204, %v519_v1 }
 0x242   :  { %v1661_v8 = vsub.f32 %v402_v22, %v528_v2  ;;  %v1663_v9 = vsub.f32 %v404_v23, %v528_v2  ;;  %v1705_v36 = vsub.f32 %v1624_v28, %v528_v2  ;;  %v1708_v39 = vsub.f32 %v1620_v24, %v528_v2 }
 0x243   :  { %v525_v4 = vpop.xlane.xlu0 %524  ;;  %v636_v0 = vpop.permute.xlu1 %635 }
 0x244   :  { %v529_v5 = vmul.f32 0.0025510204, %v525_v4  ;;  %v554_v19 = vmul.f32 %v1661_v8, %v1661_v8  ;;  %v555_v20 = vmul.f32 %v1663_v9, %v1663_v9  ;;  %v556_v49 = vmul.f32 %v1705_v36, %v1705_v36 }
 0x246   :  { %v1657_v6 = vsub.f32 %v408_v34, %v529_v5  ;;  %v1659_v7 = vsub.f32 %v410_v35, %v529_v5  ;;  %v1686_v25 = vsub.f32 %v497_v41, %v529_v5  ;;  %v1693_v29 = vsub.f32 %v1629_v38, %v529_v5 }
 0x247   :  { %v513_v10 = vpop.xlane.xlu0 %512  ;;  %v574_v24 = vadd.f32 %v555_v20, %v554_v19  ;;  %v676_v1 = vpop.permute.xlu1 %675 }
 0x248   :  { %v527_v11 = vmul.f32 0.0025510204, %v513_v10  ;;  %v558_v12 = vmul.f32 %v1657_v6, %v1657_v6  ;;  %v559_v13 = vmul.f32 %v1659_v7, %v1659_v7  ;;  %v560_v38 = vmul.f32 %v1686_v25, %v1686_v25 }
 0x249   :  { %v561_v43 = vmul.f32 %v1693_v29, %v1693_v29  ;;  %v575_v55 = vadd.f32 %v574_v24, %v556_v49 }
 0x24a   :  { %v1669_v14 = vsub.f32 %v396_v33, %v527_v11  ;;  %v1672_v15 = vsub.f32 %v1622_v27, %v527_v11  ;;  %v1674_v16 = vsub.f32 %v485_v45, %v527_v11  ;;  %v1676_v17 = vsub.f32 %v487_v47, %v527_v11 }
 0x24b   :  { %v507_v18 = vpop.xlane.xlu0 %506  ;;  %v580_v30 = vadd.f32 %v559_v13, %v558_v12  ;;  %v582_v50 = vsel %vm503_vm3, %v561_v43, 0.0  ;;  %v626_v2 = vpop.permute.xlu1 %625 }
 0x24c   :  { %v526_v21 = vmul.f32 0.0025510204, %v507_v18  ;;  %v550_v22 = vmul.f32 %v1669_v14, %v1669_v14  ;;  %v551_v23 = vmul.f32 %v1672_v15, %v1672_v15  ;;  %v552_v26 = vmul.f32 %v1674_v16, %v1674_v16 }
 0x24d   :  { %v553_v27 = vmul.f32 %v1676_v17, %v1676_v17  ;;  %v581_v45 = vadd.f32 %v580_v30, %v560_v38 }
 0x24e   :  { %v1695_v31 = vsub.f32 %v390_v44, %v526_v21  ;;  %v1698_v32 = vsub.f32 %v1627_v37, %v526_v21  ;;  %v568_v33 = vadd.f32 %v551_v23, %v550_v22  ;;  %v1700_v34 = vsub.f32 %v479_v52, %v526_v21 }
 0x24f   :  { %v1702_v35 = vsub.f32 %v481_v53, %v526_v21  ;;  %v570_v42 = vsel %vm503_vm3, %v553_v27, 0.0  ;;  %v557_v52 = vmul.f32 %v1708_v39, %v1708_v39  ;;  %v583_v53 = vadd.f32 %v582_v50, %v581_v45  ;;  %v1750_v5 = vpop.permute.xlu1 %620 }
 0x250   :  { %v569_v40 = vadd.f32 %v568_v33, %v552_v26  ;;  %v546_v41 = vmul.f32 %v1695_v31, %v1695_v31  ;;  %v547_v37 = vmul.f32 %v1698_v32, %v1698_v32  ;;  %v548_v46 = vmul.f32 %v1700_v34, %v1700_v34 }
 0x251   :  { %v549_v28 = vmul.f32 %v1702_v35, %v1702_v35  ;;  %v576_v56 = vsel %vm503_vm3, %v557_v52, 0.0 }
 0x252   :  { %v571_v44 = vadd.f32 %v570_v42, %v569_v40  ;;  %v562_v47 = vadd.f32 %v547_v37, %v546_v41  ;;  %v577_v57 = vadd.f32 %v576_v56, %v575_v55 }
 0x253   :  { %v564_v51 = vsel %vm503_vm3, %v549_v28, 0.0  ;;  %v1748_v4 = vpop.permute.xlu0 %630 }
 0x254   :  { %572 = vadd.xlane.f32.xlu1 %v571_v44  ;;  %v563_v48 = vadd.f32 %v562_v47, %v548_v46 }
 0x256   :  { %v565_v54 = vadd.f32 %v564_v51, %v563_v48 }
 0x257   :  { %v1752_v10 = vpop.permute.xlu0 %670 }
 0x258   :  { %584 = vadd.xlane.f32.xlu1 %v583_v53  ;;  %566 = vadd.xlane.f32.xlu0 %v565_v54 }
 0x25c   :  { %578 = vadd.xlane.f32.xlu0 %v577_v57 }
 0x269   :  { %660 = vperm.xlu1 %1404, %v654_v58  }
 0x26d   :  { %732 = vperm.xlu1 %1404, %v1380_v59  }
 0x271   :  { %722 = vperm.xlu1 %1404, %v1378_v60  }
 0x272   :  { %665 = vperm.xlu0 %1403, %v655_v61  }
 0x276   :  { %737 = vperm.xlu0 %1403, %v1381_v62  }
 0x27a   :  { %727 = vperm.xlu0 %1403, %v1379_v63  }
 0x2dd   :  { %v573_v11 = vpop.xlane.xlu1 %572 }
 0x2de   :  { %v587_v12 = vmul.f32 0.0025510204, %v573_v11 }
 0x2e0   :  { %v591_v13 = vadd.f32 1e-05, %v587_v12 }
 0x2e1   :  { %v585_v18 = vpop.xlane.xlu1 %584  ;;  %v567_v19 = vpop.xlane.xlu0 %566 }
 0x2e2   :  { %v589_v20 = vmul.f32 0.0025510204, %v585_v18  ;;  %v586_v21 = vmul.f32 0.0025510204, %v567_v19  ;;  %1405 = vrsqrt.f32 %v591_v13 }
 0x2e4   :  { %v593_v22 = vadd.f32 1e-05, %v589_v20  ;;  %v590_v23 = vadd.f32 1e-05, %v586_v21 }
 0x2e5   :  { %v579_v26 = vpop.xlane.xlu0 %578  ;;  %v661_v21 = vpop.permute.xlu1 %660 }
 0x2e6   :  { %1407 = vrsqrt.f32 %v593_v22  ;;  %v588_v27 = vmul.f32 0.0025510204, %v579_v26 }
 0x2e7   :  { %1409 = vrsqrt.f32 %v590_v23 }
 0x2e8   :  { %v592_v30 = vadd.f32 1e-05, %v588_v27 }
 0x2ea   :  { %1411 = vrsqrt.f32 %v592_v30 }
 0x2ed   :  { %v666_v61 = vpop.permute.xlu0 %665 }
 0x2ef   :  { %v1406_v33 = vpop.eup %1405 }
 0x2f0   :  { %v602_v38 = vmul.f32 %v1406_v33, %v1669_v14  ;;  %v604_v41 = vmul.f32 %v1406_v33, %v1674_v16  ;;  %v603_v24 = vmul.f32 %v1406_v33, %v1672_v15  ;;  %v605_v47 = vmul.f32 %v1406_v33, %v1676_v17 }
 0x2f2   :  { %v642_v49 = vmul.f32 %v626_v2, %v602_v38  ;;  %v644_v14 = vmul.f32 %v626_v2, %v604_v41  ;;  %v643_v53 = vmul.f32 %v626_v2, %v603_v24  ;;  %v645_v60 = vmul.f32 %v626_v2, %v605_v47  ;;  %v1375_v24 = vld [vmem:[%s1977_s3 + $0x28] sm:$0xff] }
 0x2f3   :  { %v1408_v40 = vpop.eup %1407 }
 0x2f4   :  { %v611_v37 = vmul.f32 %v1408_v40, %v1659_v7  ;;  %v613_v42 = vmul.f32 %v1408_v40, %v1693_v29  ;;  %v610_v43 = vmul.f32 %v1408_v40, %v1657_v6  ;;  %v612_v28 = vmul.f32 %v1408_v40, %v1686_v25  ;;  %v1410_v44 = vpop.eup %1409 }
 0x2f5   :  { %v598_v25 = vmul.f32 %v1410_v44, %v1695_v31  ;;  %v600_v57 = vmul.f32 %v1410_v44, %v1700_v34  ;;  %v682_v63 = vadd.f32 %v666_v61, %v642_v49  ;;  %v599_v11 = vmul.f32 %v1410_v44, %v1698_v32 }
 0x2f6   :  { %v651_v45 = vmul.f32 %v636_v0, %v611_v37  ;;  %v653_v46 = vmul.f32 %v636_v0, %v613_v42  ;;  %v650_v50 = vmul.f32 %v636_v0, %v610_v43  ;;  %v652_v16 = vmul.f32 %v636_v0, %v612_v28 }
 0x2f7   :  { %v1412_v48 = vpop.eup %1411  ;;  %v638_v62 = vmul.f32 %v1750_v5, %v598_v25  ;;  %v640_v12 = vmul.f32 %v1750_v5, %v600_v57  ;;  %v683_v18 = vadd.f32 %v666_v61, %v643_v53  ;;  %v685_v20 = vadd.f32 %v666_v61, %v645_v60 }
 0x2f8   :  { %v691_v51 = vadd.f32 %v676_v1, %v651_v45  ;;  %v693_v7 = vadd.f32 %v676_v1, %v653_v46  ;;  %v607_v29 = vmul.f32 %v1412_v48, %v1663_v9  ;;  %v609_v6 = vmul.f32 %v1412_v48, %v1708_v39  ;;  %v1377_v45 = vld [vmem:[%s1977_s3 + $0x38] sm:$0xff] }
 0x2f9   :  { %v690_v52 = vadd.f32 %v676_v1, %v650_v50  ;;  %v692_v15 = vadd.f32 %v676_v1, %v652_v16  ;;  %v606_v39 = vmul.f32 %v1412_v48, %v1661_v8  ;;  %v608_v0 = vmul.f32 %v1412_v48, %v1705_v36  ;;  %v738_v16 = vpop.permute.xlu0 %737 }
 0x2fa   :  { %v707_v54 = vmax.f32 %v691_v51, 0.0  ;;  %v709_v55 = vmax.f32 %v693_v7, 0.0  ;;  %v647_v17 = vmul.f32 %v1748_v4, %v607_v29  ;;  %v649_v56 = vmul.f32 %v1748_v4, %v609_v6  ;;  %v733_v6 = vpop.permute.xlu1 %732 }
 0x2fb   :  { %v706_v58 = vmax.f32 %v690_v52, 0.0  ;;  %v708_v59 = vmax.f32 %v692_v15, 0.0  ;;  %v646_v2 = vmul.f32 %v1748_v4, %v606_v39  ;;  %v648_v13 = vmul.f32 %v1748_v4, %v608_v0 }
 0x2fc   :  { %776 = vmatprep.subr.mxu0 %v707_v54  ;;  %865 = vmatprep.subr.mxu1 %v709_v55  ;;  %v687_v9 = vadd.f32 %v1752_v10, %v647_v17  ;;  %v689_v31 = vadd.f32 %v1752_v10, %v649_v56  ;;  %v601_v8 = vmul.f32 %v1410_v44, %v1702_v35  ;;  %v699_v40 = vmax.f32 %v683_v18, 0.0  ;;  %v1376_v44 = vld [vmem:[%s1977_s3 + $0x30] sm:$0xff] }
 0x2fd   :  { %777 = vmatpush1.msra.mxu0 %v706_v58  ;;  %866 = vmatpush1.msra.mxu1 %v708_v59  ;;  %v686_v19 = vadd.f32 %v1752_v10, %v646_v2  ;;  %v639_v36 = vmul.f32 %v1750_v5, %v599_v11  ;;  %v684_v22 = vadd.f32 %v666_v61, %v644_v14  ;;  %v698_v38 = vmax.f32 %v682_v63, 0.0  ;;  %v728_v55 = vpop.permute.xlu0 %727 }
 0x2fe   :  { %v703_v34 = vmax.f32 %v687_v9, 0.0  ;;  %v705_v1 = vmax.f32 %v689_v31, 0.0  ;;  %v688_v23 = vadd.f32 %v1752_v10, %v648_v13  ;;  %v641_v32 = vmul.f32 %v1750_v5, %v601_v8  ;;  %v1374_v5 = vld [vmem:[%s1977_s3 + $0x20] sm:$0xff]  ;;  %v723_v61 = vpop.permute.xlu1 %722 }
 0x2ff   :  { %v678_v26 = vadd.f32 %v661_v21, %v638_v62  ;;  %v702_v27 = vmax.f32 %v686_v19, 0.0  ;;  %v679_v30 = vadd.f32 %v661_v21, %v639_v36  ;;  %v680_v4 = vadd.f32 %v661_v21, %v640_v12 }
 0x300   :  { %778 = vmatprep.subr.mxu0 %v703_v34  ;;  %867 = vmatprep.subr.mxu1 %v705_v1  ;;  %v704_v33 = vmax.f32 %v688_v23, 0.0  ;;  %v681_v35 = vadd.f32 %v661_v21, %v641_v32  ;;  %v701_v41 = vmax.f32 %v685_v20, 0.0  ;;  %v700_v37 = vmax.f32 %v684_v22, 0.0 }
 0x301   :  { %779 = vmatpush1.msra.mxu0 %v702_v27  ;;  %v695_v42 = vmax.f32 %v679_v30, 0.0  ;;  %v694_v43 = vmax.f32 %v678_v26, 0.0  ;;  %v696_v28 = vmax.f32 %v680_v4, 0.0 }
 0x302   :  { %868 = vmatpush1.msra.mxu1 %v704_v33  ;;  %780 = vmatprep.subr.mxu0 %v699_v40  ;;  %v697_v10 = vmax.f32 %v681_v35, 0.0  ;;  %v1393_v35 = vld [vmem:[%s1978_s5 + $0x38] sm:$0xff] }
 0x303   :  { %869 = vmatprep.subr.mxu1 %v701_v41  ;;  %781 = vmatpush1.msra.mxu0 %v698_v38  ;;  %v1397_v38 = vld [vmem:[%s1979_s6 + $0x38] sm:$0xff]  ;;  %v1391_v41 = vld [vmem:[%s1978_s5 + $0x28] sm:$0xff] }
 0x304   :  { %870 = vmatpush1.msra.mxu1 %v700_v37  ;;  %782 = vmatprep.subr.mxu0 %v695_v42  ;;  %v1390_v37 = vld [vmem:[%s1978_s5 + $0x20] sm:$0xff]  ;;  %v1392_v42 = vld [vmem:[%s1978_s5 + $0x30] sm:$0xff] }
 0x305   :  { %871 = vmatprep.subr.mxu1 %v697_v10  ;;  %783 = vmatpush1.msra.mxu0 %v694_v43  ;;  %v1396_v43 = vld [vmem:[%s1979_s6 + $0x30] sm:$0xff]  ;;  %v14_v10 = vstv %s1980_s8 }
 0x306   :  { %872 = vmatpush1.msra.mxu1 %v696_v28  ;;  %1382 = vmatmul.mubr.msk.f32.vlgmr.msra.gmra.mxu0 %vm310_vm2, %v1374_v5  ;;  %15 = vst [vmem:[#allocation2] sm:$0x1] %v14_v10 }
 0x307   :  { %1386 = vmatmul.mubr.msk.f32.vlgmr.msra.gmra.mxu1 %vm310_vm2, %v1374_v5  ;;  %822 = vmatprep.mubr.f32.mxu0 %v1437_v3 }
 0x308   :  { %911 = vmatprep.mubr.f32.mxu1 %v1437_v3 }
 0x30a   :  { %1383 = vmatmul.mubr.msk.f32.gmra.mxu0 %vm310_vm2, %v1375_v24 }
 0x30b   :  { %1387 = vmatmul.mubr.msk.f32.gmra.mxu1 %vm310_vm2, %v1375_v24  ;;  %828 = vmatprep.mubr.f32.mxu0 %v1437_v3 }
 0x30c   :  { %917 = vmatprep.mubr.f32.mxu1 %v1437_v3 }
 0x30e   :  { %1384 = vmatmul.mubr.msk.f32.gmra.mxu0 %vm310_vm2, %v1376_v44 }
 0x30f   :  { %1388 = vmatmul.mubr.msk.f32.gmra.mxu1 %vm310_vm2, %v1376_v44  ;;  %834 = vmatprep.mubr.f32.mxu0 %v1437_v3 }
 0x310   :  { %923 = vmatprep.mubr.f32.mxu1 %v1437_v3 }
 0x312   :  { %1385 = vmatmul.mubr.msk.f32.gmra.mxu0 %vm310_vm2, %v1377_v45 }
 0x313   :  { %1389 = vmatmul.mubr.msk.f32.gmra.mxu1 %vm310_vm2, %v1377_v45  ;;  %1218 = vmatprep.mubr.f32.mxu0 %v1437_v3 }
 0x314   :  { %1289 = vmatprep.mubr.f32.mxu1 %v1437_v3 }
 0x3c6   :  { %v818_v46 = vpop.f32.mrf.mxu0 }
 0x3c7   :  { %v907_v47 = vpop.f32.mrf.mxu1  ;;  %v819_v18 = vadd.f32 %v818_v46, %v723_v61 }
 0x3c8   :  { %v820_v48 = vpop.f32.mrf.mxu0  ;;  %v908_v32 = vadd.f32 %v907_v47, %v723_v61 }
 0x3c9   :  { %v909_v49 = vpop.f32.mrf.mxu1  ;;  %v1823_v0 = vadd.f32 %v820_v48, %v723_v61 }
 0x3ca   :  { %v824_v14 = vpop.f32.mrf.mxu0  ;;  %v910_v26 = vadd.f32 %v909_v49, %v723_v61 }
 0x3cb   :  { %v913_v50 = vpop.f32.mrf.mxu1  ;;  %v825_v9 = vadd.f32 %v824_v14, %v728_v55  ;;  %v930_v21 = vadd.f32 %v1823_v0, %v819_v18 }
 0x3cc   :  { %v826_v51 = vpop.f32.mrf.mxu0  ;;  %v914_v8 = vadd.f32 %v913_v50, %v728_v55  ;;  %v932_v33 = vsel %vm503_vm3, %v910_v26, 0.0 }
 0x3cd   :  { %v915_v7 = vpop.f32.mrf.mxu1  ;;  %v1816_v56 = vadd.f32 %v826_v51, %v728_v55  ;;  %v931_v4 = vadd.f32 %v930_v21, %v908_v32 }
 0x3ce   :  { %v830_v29 = vpop.f32.mrf.mxu0  ;;  %v916_v20 = vadd.f32 %v915_v7, %v728_v55 }
 0x3cf   :  { %v919_v25 = vpop.f32.mrf.mxu1  ;;  %v1810_v15 = vadd.f32 %v830_v29, %v733_v6  ;;  %v936_v2 = vadd.f32 %v1816_v56, %v825_v9  ;;  %v933_v40 = vadd.f32 %v932_v33, %v931_v4 }
 0x3d0   :  { %v832_v52 = vpop.f32.mrf.mxu0  ;;  %v1818_v57 = vadd.f32 %v919_v25, %v733_v6  ;;  %v938_v27 = vsel %vm503_vm3, %v916_v20, 0.0 }
 0x3d1   :  { %v1812_v53 = vadd.f32 %v832_v52, %v733_v6  ;;  %v921_v54 = vpop.f32.mrf.mxu1  ;;  %v937_v23 = vadd.f32 %v936_v2, %v914_v8 }
 0x3d2   :  { %v1814_v3 = vadd.f32 %v921_v54, %v733_v6  ;;  %v836_v17 = vpop.f32.mrf.mxu0 }
 0x3d3   :  { %v942_v58 = vadd.f32 %v1812_v53, %v1810_v15  ;;  %v925_v59 = vpop.f32.mrf.mxu1  ;;  %v837_v31 = vadd.f32 %v836_v17, %v738_v16  ;;  %v939_v30 = vadd.f32 %v938_v27, %v937_v23 }
 0x3d4   :  { %v838_v60 = vpop.f32.mrf.mxu0  ;;  %v944_v1 = vsel %vm503_vm3, %v1814_v3, 0.0  ;;  %v926_v11 = vadd.f32 %v925_v59, %v738_v16 }
 0x3d5   :  { %v839_v39 = vadd.f32 %v838_v60, %v738_v16  ;;  %v927_v62 = vpop.f32.mrf.mxu1  ;;  %v943_v63 = vadd.f32 %v942_v58, %v1818_v57 }
 0x3d6   :  { %v1825_v34 = vadd.f32 %v927_v62, %v738_v16 }
 0x3d7   :  { %v948_v12 = vadd.f32 %v839_v39, %v837_v31  ;;  %v945_v13 = vadd.f32 %v944_v1, %v943_v63 }
 0x3d8   :  { %v950_v36 = vsel %vm503_vm3, %v1825_v34, 0.0 }
 0x3d9   :  { %946 = vadd.xlane.f32.xlu1 %v945_v13  ;;  %v949_v19 = vadd.f32 %v948_v12, %v926_v11 }
 0x3db   :  { %v951_v22 = vadd.f32 %v950_v36, %v949_v19 }
 0x3dd   :  { %952 = vadd.xlane.f32.xlu0 %v951_v22 }
 0x3e1   :  { %940 = vadd.xlane.f32.xlu0 %v939_v30 }
 0x3e5   :  { %934 = vadd.xlane.f32.xlu0 %v933_v40  ;;  %v1394_v40 = vld [vmem:[%s1979_s6 + $0x20] sm:$0xff] }
 0x3ea   :  { %1064 = vperm.xlu1 %1404, %v1393_v35   ;;  %v1395_v35 = vld [vmem:[%s1979_s6 + $0x28] sm:$0xff] }
 0x3ee   :  { %1105 = vperm.xlu1 %1404, %v1397_v38   ;;  %v1141_v38 = vld [vmem:[#allocation2] sm:$0x1] }
 0x3f2   :  { %1054 = vperm.xlu1 %1404, %v1391_v41  }
 0x3f6   :  { %1049 = vperm.xlu1 %1404, %v1390_v37  }
 0x3fb   :  { %1059 = vperm.xlu0 %1403, %v1392_v42  }
 0x3ff   :  { %1100 = vperm.xlu0 %1403, %v1396_v43  }
 0x462   :  { %v947_v5 = vpop.xlane.xlu1 %946 }
 0x463   :  { %v956_v28 = vmul.f32 0.0025510204, %v947_v5 }
 0x465   :  { %v1861_v47 = vsub.f32 %v1810_v15, %v956_v28  ;;  %v1864_v48 = vsub.f32 %v1812_v53, %v956_v28  ;;  %v1906_v63 = vsub.f32 %v1818_v57, %v956_v28  ;;  %v1909_v1 = vsub.f32 %v1814_v3, %v956_v28 }
 0x466   :  { %v953_v24 = vpop.xlane.xlu0 %952  ;;  %v1065_v41 = vpop.permute.xlu1 %1064 }
 0x467   :  { %v957_v44 = vmul.f32 0.0025510204, %v953_v24  ;;  %v982_v52 = vmul.f32 %v1861_v47, %v1861_v47  ;;  %v983_v15 = vmul.f32 %v1864_v48, %v1864_v48  ;;  %v984_v21 = vmul.f32 %v1906_v63, %v1906_v63 }
 0x469   :  { %v1856_v45 = vsub.f32 %v837_v31, %v957_v44  ;;  %v1858_v46 = vsub.f32 %v839_v39, %v957_v44  ;;  %v1887_v17 = vsub.f32 %v926_v11, %v957_v44  ;;  %v1894_v59 = vsub.f32 %v1825_v34, %v957_v44 }
 0x46a   :  { %v941_v49 = vpop.xlane.xlu0 %940  ;;  %v1002_v3 = vadd.f32 %v983_v15, %v982_v52  ;;  %v1106_v37 = vpop.permute.xlu1 %1105 }
 0x46b   :  { %v955_v14 = vmul.f32 0.0025510204, %v941_v49  ;;  %v986_v50 = vmul.f32 %v1856_v45, %v1856_v45  ;;  %v987_v16 = vmul.f32 %v1858_v46, %v1858_v46  ;;  %v988_v34 = vmul.f32 %v1887_v17, %v1887_v17 }
 0x46c   :  { %v989_v13 = vmul.f32 %v1894_v59, %v1894_v59  ;;  %v1003_v30 = vadd.f32 %v1002_v3, %v984_v21 }
 0x46d   :  { %v1870_v51 = vsub.f32 %v825_v9, %v955_v14  ;;  %v1873_v7 = vsub.f32 %v1816_v56, %v955_v14  ;;  %v1875_v29 = vsub.f32 %v914_v8, %v955_v14  ;;  %v1877_v6 = vsub.f32 %v916_v20, %v955_v14 }
 0x46e   :  { %v935_v25 = vpop.xlane.xlu0 %934  ;;  %v1008_v60 = vadd.f32 %v987_v16, %v986_v50  ;;  %v1010_v22 = vsel %vm503_vm3, %v989_v13, 0.0  ;;  %v1055_v42 = vpop.permute.xlu1 %1054 }
 0x46f   :  { %v954_v53 = vmul.f32 0.0025510204, %v935_v25  ;;  %v978_v54 = vmul.f32 %v1870_v51, %v1870_v51  ;;  %v979_v55 = vmul.f32 %v1873_v7, %v1873_v7  ;;  %v980_v56 = vmul.f32 %v1875_v29, %v1875_v29 }
 0x470   :  { %v981_v58 = vmul.f32 %v1877_v6, %v1877_v6  ;;  %v1009_v8 = vadd.f32 %v1008_v60, %v988_v34 }
 0x471   :  { %v1896_v61 = vsub.f32 %v819_v18, %v954_v53  ;;  %v1899_v9 = vsub.f32 %v1823_v0, %v954_v53  ;;  %v996_v31 = vadd.f32 %v979_v55, %v978_v54  ;;  %v1901_v39 = vsub.f32 %v908_v32, %v954_v53 }
 0x472   :  { %v1903_v62 = vsub.f32 %v910_v26, %v954_v53  ;;  %v998_v12 = vsel %vm503_vm3, %v981_v58, 0.0  ;;  %v985_v32 = vmul.f32 %v1909_v1, %v1909_v1  ;;  %v1011_v26 = vadd.f32 %v1010_v22, %v1009_v8  ;;  %v1050_v10 = vpop.permute.xlu1 %1049 }
 0x473   :  { %v997_v2 = vadd.f32 %v996_v31, %v980_v56  ;;  %v974_v11 = vmul.f32 %v1896_v61, %v1896_v61  ;;  %v975_v0 = vmul.f32 %v1899_v9, %v1899_v9  ;;  %v976_v19 = vmul.f32 %v1901_v39, %v1901_v39 }
 0x474   :  { %v977_v57 = vmul.f32 %v1903_v62, %v1903_v62  ;;  %v1004_v4 = vsel %vm503_vm3, %v985_v32, 0.0 }
 0x475   :  { %v999_v18 = vadd.f32 %v998_v12, %v997_v2  ;;  %v990_v20 = vadd.f32 %v975_v0, %v974_v11  ;;  %v1005_v33 = vadd.f32 %v1004_v4, %v1003_v30 }
 0x476   :  { %v992_v23 = vsel %vm503_vm3, %v977_v57, 0.0  ;;  %v1937_v43 = vpop.permute.xlu0 %1059 }
 0x477   :  { %1000 = vadd.xlane.f32.xlu1 %v999_v18  ;;  %v991_v36 = vadd.f32 %v990_v20, %v976_v19 }
 0x479   :  { %v993_v27 = vadd.f32 %v992_v23, %v991_v36 }
 0x47a   :  { %v1939_v5 = vpop.permute.xlu0 %1100 }
 0x47b   :  { %1012 = vadd.xlane.f32.xlu1 %v1011_v26  ;;  %994 = vadd.xlane.f32.xlu0 %v993_v27 }
 0x47f   :  { %1006 = vadd.xlane.f32.xlu0 %v1005_v33 }
 0x48c   :  { %1090 = vperm.xlu1 %1404, %v1394_v40  }
 0x495   :  { %1095 = vperm.xlu0 %1403, %v1395_v35  }
 0x499   :  { %1144 = vperm.xlu0 %1403, %v1141_v38  }
 0x500   :  { %v1001_v28 = vpop.xlane.xlu1 %1000 }
 0x501   :  { %v1015_v24 = vmul.f32 0.0025510204, %v1001_v28 }
 0x503   :  { %v1019_v44 = vadd.f32 1e-05, %v1015_v24 }
 0x504   :  { %v1013_v49 = vpop.xlane.xlu1 %1012  ;;  %v995_v14 = vpop.xlane.xlu0 %994 }
 0x505   :  { %1413 = vrsqrt.f32 %v1019_v44  ;;  %v1017_v50 = vmul.f32 0.0025510204, %v1013_v49  ;;  %v1014_v16 = vmul.f32 0.0025510204, %v995_v14 }
 0x507   :  { %v1021_v25 = vadd.f32 1e-05, %v1017_v50  ;;  %v1018_v52 = vadd.f32 1e-05, %v1014_v16 }
 0x508   :  { %v1007_v15 = vpop.xlane.xlu0 %1006 }
 0x509   :  { %1415 = vrsqrt.f32 %v1021_v25  ;;  %v1016_v53 = vmul.f32 0.0025510204, %v1007_v15 }
 0x50a   :  { %1417 = vrsqrt.f32 %v1018_v52 }
 0x50b   :  { %v1020_v54 = vadd.f32 1e-05, %v1016_v53 }
 0x50d   :  { %1419 = vrsqrt.f32 %v1020_v54 }
 0x512   :  { %v1414_v55 = vpop.eup %1413 }
 0x513   :  { %v1030_v56 = vmul.f32 %v1414_v55, %v1870_v51  ;;  %v1032_v60 = vmul.f32 %v1414_v55, %v1875_v29  ;;  %v1031_v31 = vmul.f32 %v1414_v55, %v1873_v7  ;;  %v1033_v12 = vmul.f32 %v1414_v55, %v1877_v6  ;;  %v1096_v29 = vpop.permute.xlu0 %1095 }
 0x515   :  { %v1071_v0 = vmul.f32 %v1055_v42, %v1030_v56  ;;  %v1073_v51 = vmul.f32 %v1055_v42, %v1032_v60  ;;  %v1072_v8 = vmul.f32 %v1055_v42, %v1031_v31  ;;  %v1074_v22 = vmul.f32 %v1055_v42, %v1033_v12 }
 0x516   :  { %v1416_v58 = vpop.eup %1415 }
 0x517   :  { %v1418_v2 = vpop.eup %1417  ;;  %v1039_v34 = vmul.f32 %v1416_v58, %v1858_v46  ;;  %v1041_v11 = vmul.f32 %v1416_v58, %v1894_v59  ;;  %v1038_v36 = vmul.f32 %v1416_v58, %v1856_v45  ;;  %v1040_v46 = vmul.f32 %v1416_v58, %v1887_v17 }
 0x518   :  { %v1026_v3 = vmul.f32 %v1418_v2, %v1896_v61  ;;  %v1027_v18 = vmul.f32 %v1418_v2, %v1899_v9  ;;  %v1028_v59 = vmul.f32 %v1418_v2, %v1901_v39  ;;  %v1029_v6 = vmul.f32 %v1418_v2, %v1903_v62 }
 0x519   :  { %v1080_v13 = vmul.f32 %v1065_v41, %v1039_v34  ;;  %v1082_v57 = vmul.f32 %v1065_v41, %v1041_v11  ;;  %v1112_v21 = vadd.f32 %v1096_v29, %v1071_v0  ;;  %v1079_v32 = vmul.f32 %v1065_v41, %v1038_v36 }
 0x51a   :  { %v1420_v19 = vpop.eup %1419  ;;  %v1081_v9 = vmul.f32 %v1065_v41, %v1040_v46  ;;  %v1067_v26 = vmul.f32 %v1050_v10, %v1026_v3  ;;  %v1068_v27 = vmul.f32 %v1050_v10, %v1027_v18  ;;  %v1069_v33 = vmul.f32 %v1050_v10, %v1028_v59 }
 0x51b   :  { %v1121_v20 = vadd.f32 %v1106_v37, %v1080_v13  ;;  %v1123_v7 = vadd.f32 %v1106_v37, %v1082_v57  ;;  %v1035_v30 = vmul.f32 %v1420_v19, %v1864_v48  ;;  %v1037_v4 = vmul.f32 %v1420_v19, %v1909_v1  ;;  %v1145_v13 = vpop.permute.xlu0 %1144 }
 0x51c   :  { %v1120_v45 = vadd.f32 %v1106_v37, %v1079_v32  ;;  %v1122_v17 = vadd.f32 %v1106_v37, %v1081_v9  ;;  %v1034_v39 = vmul.f32 %v1420_v19, %v1861_v47  ;;  %v1036_v35 = vmul.f32 %v1420_v19, %v1906_v63  ;;  %v1091_v47 = vpop.permute.xlu1 %1090 }
 0x51d   :  { %v1137_v23 = vmax.f32 %v1121_v20, 0.0  ;;  %v1139_v61 = vmax.f32 %v1123_v7, 0.0  ;;  %v1076_v62 = vmul.f32 %v1937_v43, %v1035_v30  ;;  %v1078_v40 = vmul.f32 %v1937_v43, %v1037_v4 }
 0x51e   :  { %v1070_v38 = vmul.f32 %v1050_v10, %v1029_v6  ;;  %v1136_v41 = vmax.f32 %v1120_v45, 0.0  ;;  %v1138_v42 = vmax.f32 %v1122_v17, 0.0  ;;  %v1075_v48 = vmul.f32 %v1937_v43, %v1034_v39 }
 0x51f   :  { %1178 = vmatprep.subr.mxu0 %v1137_v23  ;;  %1249 = vmatprep.subr.mxu1 %v1139_v61  ;;  %v1117_v1 = vadd.f32 %v1939_v5, %v1076_v62  ;;  %v1119_v28 = vadd.f32 %v1939_v5, %v1078_v40  ;;  %v1077_v37 = vmul.f32 %v1937_v43, %v1036_v35  ;;  %v1128_v55 = vmax.f32 %v1112_v21, 0.0 }
 0x520   :  { %v1113_v24 = vadd.f32 %v1096_v29, %v1072_v8  ;;  %v1114_v44 = vadd.f32 %v1096_v29, %v1073_v51  ;;  %1179 = vmatpush1.msra.mxu0 %v1136_v41  ;;  %1250 = vmatpush1.msra.mxu1 %v1138_v42  ;;  %v1116_v49 = vadd.f32 %v1939_v5, %v1075_v48  ;;  %v1147_v11 = vlaneseq }
 0x521   :  { %v1115_v14 = vadd.f32 %v1096_v29, %v1074_v22  ;;  %v1109_v63 = vadd.f32 %v1091_v47, %v1068_v27  ;;  %v1133_v10 = vmax.f32 %v1117_v1, 0.0  ;;  %v1135_v50 = vmax.f32 %v1119_v28, 0.0 }
 0x522   :  { %v1118_v16 = vadd.f32 %v1939_v5, %v1077_v37  ;;  %v1108_v25 = vadd.f32 %v1091_v47, %v1067_v26  ;;  %v1111_v52 = vadd.f32 %v1091_v47, %v1070_v38  ;;  %v1132_v15 = vmax.f32 %v1116_v49, 0.0  ;;  %v1140_v5 = vld [vmem:[%s1981_s7] sm:$0x1] }
 0x523   :  { %v1110_v53 = vadd.f32 %v1091_v47, %v1069_v33  ;;  %1180 = vmatprep.subr.mxu0 %v1133_v10  ;;  %1251 = vmatprep.subr.mxu1 %v1135_v50  ;;  %v1129_v54 = vmax.f32 %v1113_v24, 0.0  ;;  %v1131_v56 = vmax.f32 %v1115_v14, 0.0  ;;  %v1130_v58 = vmax.f32 %v1114_v44, 0.0 }
 0x524   :  { %v1134_v43 = vmax.f32 %v1118_v16, 0.0  ;;  %1181 = vmatpush1.msra.mxu0 %v1132_v15  ;;  %v1125_v60 = vmax.f32 %v1109_v63, 0.0  ;;  %v1124_v31 = vmax.f32 %v1108_v25, 0.0  ;;  %v1127_v2 = vmax.f32 %v1111_v52, 0.0 }
 0x525   :  { %1182 = vmatprep.subr.mxu0 %v1129_v54  ;;  %v1126_v34 = vmax.f32 %v1110_v53, 0.0  ;;  %v1148_v0 = vshrl.u32 %v1147_v11, 7  ;;  %v1439_v39 = vmov 1966171168   ;;  %vm1347_vm4 = vcmp.lt.s32.totalorder %v1147_v11, 392 }
 0x526   :  { %1252 = vmatpush1.msra.mxu1 %v1134_v43  ;;  %1183 = vmatpush1.msra.mxu0 %v1128_v55  ;;  %v1323_v33 = vunpack.c.l.s4 %v1439_v39 }
 0x527   :  { %1253 = vmatprep.subr.mxu1 %v1131_v56  ;;  %1184 = vmatprep.subr.mxu0 %v1125_v60  ;;  %v1149_v12 = vsub.s32 0, %v1148_v0 }
 0x528   :  { %1254 = vmatpush1.msra.mxu1 %v1130_v58  ;;  %1185 = vmatpush1.msra.mxu0 %v1124_v31  ;;  %v1324_v62 = vunpack.c.0.s8 %v1323_v33 }
 0x529   :  { %1255 = vmatprep.subr.mxu1 %v1127_v2  ;;  %1398 = vmatmul.mubr.msk.f32.vlgmr.msra.gmra.mxu0 %vm310_vm2, %v1140_v5  ;;  %v1150_v57 = vrot.slane %v1145_v13, %v1149_v12 }
 0x52a   :  { %1256 = vmatpush1.msra.mxu1 %v1126_v34  ;;  %v1327_v38 = vsub.s32 %v1324_v62, %v1148_v0 }
 0x52b   :  { %1399 = vmatmul.mubr.msk.f32.vlgmr.msra.gmra.mxu1 %vm310_vm2, %v1140_v5 }
 0x5e9   :  { %v1220_v3 = vpop.f32.mrf.mxu0 }
 0x5ea   :  { %v1221_v18 = vadd.f32 %v1220_v3, %v1150_v57 }
 0x5eb   :  { %v1291_v51 = vpop.f32.mrf.mxu1  ;;  %v1222_v19 = vpop.f32.mrf.mxu0 }
 0x5ec   :  { %v1292_v8 = vadd.f32 %v1291_v51, %v1150_v57  ;;  %v1296_v29 = vsub.f32 0.0, %v1221_v18  ;;  %v1223_v20 = vadd.f32 %v1222_v19, %v1150_v57 }
 0x5ed   :  { %v1293_v7 = vpop.f32.mrf.mxu1 }
 0x5ee   :  { %v1298_v36 = vsub.f32 0.0, %v1292_v8  ;;  %v1294_v46 = vadd.f32 %v1293_v7, %v1150_v57  ;;  %v1300_v59 = vmul.f32 1.442695, %v1296_v29  ;;  %v1297_v6 = vsub.f32 0.0, %v1223_v20 }
 0x5f0   :  { %v1304_v21 = vmul.f32 1.442695, %v1298_v36  ;;  %v1299_v22 = vsub.f32 0.0, %v1294_v46  ;;  %1421 = vpow2.f32 %v1300_v59  ;;  %v1302_v23 = vmul.f32 1.442695, %v1297_v6 }
 0x5f2   :  { %1423 = vpow2.f32 %v1304_v21  ;;  %v1306_v61 = vmul.f32 1.442695, %v1299_v22 }
 0x5f3   :  { %1425 = vpow2.f32 %v1302_v23 }
 0x5f4   :  { %1427 = vpow2.f32 %v1306_v61 }
 0x5fd   :  { %v1422_v32 = vpop.eup %1421 }
 0x5fe   :  { %v1308_v26 = vadd.f32 1.0, %v1422_v32 }
 0x5ff   :  { %v1424_v9 = vpop.eup %1423 }
 0x600   :  { %v1426_v27 = vpop.eup %1425  ;;  %v1310_v30 = vadd.f32 1.0, %v1424_v9  ;;  %1429 = vrcp.f32 %v1308_v26 }
 0x601   :  { %v1428_v4 = vpop.eup %1427  ;;  %v1309_v45 = vadd.f32 1.0, %v1426_v27 }
 0x602   :  { %1431 = vrcp.f32 %v1310_v30  ;;  %v1311_v17 = vadd.f32 1.0, %v1428_v4 }
 0x603   :  { %1433 = vrcp.f32 %v1309_v45 }
 0x604   :  { %1435 = vrcp.f32 %v1311_v17 }
 0x60d   :  { %v1430_v40 = vpop.eup %1429 }
 0x60f   :  { %v1432_v35 = vpop.eup %1431 }
 0x610   :  { %v1434_v41 = vpop.eup %1433 }
 0x611   :  { %v1436_v42 = vpop.eup %1435  ;;  %v1320_v48 = vcombine.low %v1430_v40, %v1434_v41 }
 0x612   :  { %v1321_v1 = vcombine.low %v1432_v35, %v1436_v42 }
 0x613   :  { %v1328_v28 = vrot.slane %v1320_v48, %v1327_v38 }
 0x614   :  { %v1335_v37 = vrot.slane %v1321_v1, %v1327_v38 }
 0x616   :  { %v1336_v24 = vcombine.low %v1328_v28, %v1335_v37 }
 0x618   :  { %v1343_v47 = vrot.slane %v1336_v24, %v1327_v38 }
 0x61a   :  { %1349 = vst.msk [vmem:[%s1982_s9] sm:$0xf] %vm1347_vm4, %v1343_v47 }

</bundles_post_ra>
